<compile_context>
chip_gen: v7x
topology: tpu7x:2x2x1
jax: 0.10.0
libtpu: 0.0.40
codegen_flags: <defaults>
</compile_context>

<pallas_src>
import jax
import jax.numpy as jnp
from jax.experimental import pallas as pl
from jax.experimental.pallas import tpu as pltpu


def _bn_relu_t(h, gamma, beta):
    # nn.BatchNorm1d (training mode) in transposed layout: h is (H, TB),
    # statistics over the batch = lane axis (XLU reduce), biased var, eps=1e-5.
    mu = jnp.mean(h, axis=1, keepdims=True)
    var = jnp.mean((h - mu) ** 2, axis=1, keepdims=True)
    hn = (h - mu) * jax.lax.rsqrt(var + 1e-5)
    return jnp.maximum(hn * gamma + beta, 0.0)


def lorenz_kernel(x_ref, vec_ref, w2t_ref, w3b_ref, out_ref):
    """Transposed (feature-major, batch-on-lane) layout.
       x_ref:   (8, TB)    rows = [px0,py0,pz0,E0, px1,py1,pz1,E1]
       vec_ref: (H, 8)     cols = [w1_row0, w1_row1, b1, g1, be1, b2, g2, be2]
       w2t_ref: (H, H)     = W2^T
       w3b_ref: (OUT, H+1) = [W3^T | b3]
       out_ref: (OUT, TB)  lane-dense output (batch on lanes)."""
    H = w2t_ref.shape[0]

    x = x_ref[...]                        # (8, TB), one full-lane vreg per 8 rows
    p1 = x[0:4, :]                        # particle 0 four-vector (4, TB)
    p2 = x[4:8, :]                        # particle 1 four-vector (4, TB)

    # Minkowski inner product:  E0*E1 - px0*px1 - py0*py1 - pz0*pz1   (VPU only)
    prod = p1 * p2                                                      # (4, TB)
    mip = prod[3:4, :] - prod[0:1, :] - prod[1:2, :] - prod[2:3, :]     # (1, TB)

    # Squared Minkowski norm of the difference.
    d = p2 - p1
    dd = d * d
    smn = dd[3:4, :] - dd[0:1, :] - dd[1:2, :] - dd[2:3, :]             # (1, TB)

    # (2, TB); normalize both features with a single mean/var (lane-reduce) pass.
    feats = jnp.concatenate([mip, smn], axis=0)
    mu = jnp.mean(feats, axis=1, keepdims=True)
    var = jnp.mean((feats - mu) ** 2, axis=1, keepdims=True)
    feats = (feats - mu) * jax.lax.rsqrt(var + 1e-12)

    vec = vec_ref[...]                    # (H, 8)

    # Layer 1: Linear(2, H).  K=2 contraction -> two VPU broadcast FMAs, not MXU.
    h = (vec[:, 0:1] * feats[0:1, :]
         + vec[:, 1:2] * feats[1:2, :]
         + vec[:, 2:3])                   # + b1 ; (H, TB)
    h = _bn_relu_t(h, vec[:, 3:4], vec[:, 4:5])

    # Layer 2: Linear(H, H) on the MXU:  W2^T @ h.
    h = jnp.dot(w2t_ref[...], h, preferred_element_type=jnp.float32) + vec[:, 5:6]
    h = _bn_relu_t(h, vec[:, 6:7], vec[:, 7:8])

    # Layer 3: Linear(H, OUT):  W3^T @ h  -> (OUT, TB), lane-dense store.
    w3b = w3b_ref[...]                    # (OUT, H+1)
    out = jnp.dot(w3b[:, :H], h, preferred_element_type=jnp.float32) + w3b[:, H:]
    out_ref[...] = out.astype(out_ref.dtype)


def lorenz_invariant_network(x, params, *, block_b=None):
    """x: (B, 2, 4) float32.  Returns (B, output_dimension) float32."""
    B = x.shape[0]
    assert x.shape[1:] == (2, 4)
    # (B,2,4) -> (8,B): tiny wrapper-side transpose so the kernel sees the batch
    # on the lane axis everywhere (layout plumbing, not compute hoisting).
    x_t = x.reshape(B, 8).T
    H = params["w2t"].shape[0]
    out_dim = params["w3b"].shape[0]

    if block_b is None:
        block_b = B                       # full batch in one tile -> exact statistics
    if block_b != B:
        # Tiled path (per-tile statistics, see TODO above); layout constraints.
        assert B % block_b == 0 and block_b % 128 == 0
    grid = (B // block_b,)

    out_t = pl.pallas_call(
        lorenz_kernel,
        out_shape=jax.ShapeDtypeStruct((out_dim, B), jnp.float32),
        grid=grid,
        in_specs=[
            pl.BlockSpec((8, block_b), lambda i: (0, i)),        # x: tiled along batch (lanes)
            pl.BlockSpec((H, 8), lambda i: (0, 0)),              # packed vectors: resident
            pl.BlockSpec((H, H), lambda i: (0, 0)),              # W2^T: resident
            pl.BlockSpec((out_dim, H + 1), lambda i: (0, 0)),    # [W3^T | b3]: resident
        ],
        out_specs=pl.BlockSpec((out_dim, block_b), lambda i: (0, i)),
        compiler_params=pltpu.CompilerParams(
            dimension_semantics=("parallel",),                   # v7x: 2 TCs share the batch
            vmem_limit_bytes=32 * 1024 * 1024,                   # safe on v5e/v6e/v7x
        ),
    )(x_t, params["vecs"], params["w2t"], params["w3b"])

    return out_t.T                        # back to (B, OUT)


def init_params(key, hidden_dim, output_dim):
    """PyTorch-default init (Linear: U(+-1/sqrt(fan_in)), BatchNorm1d: gamma=1, beta=0),
    packed into 3 arrays (already transposed for the kernel's lane-dense layout)."""
    def lin_init(k, fan_in, fan_out):
        ka, kb = jax.random.split(k)
        bound = 1.0 / (fan_in ** 0.5)
        w = jax.random.uniform(ka, (fan_in, fan_out), jnp.float32, -bound, bound)
        b = jax.random.uniform(kb, (fan_out,), jnp.float32, -bound, bound)
        return w, b

    k1, k2, k3 = jax.random.split(key, 3)
    w1, b1 = lin_init(k1, 2, hidden_dim)              # (2,H), (H,)
    w2, b2 = lin_init(k2, hidden_dim, hidden_dim)     # (H,H), (H,)
    w3, b3 = lin_init(k3, hidden_dim, output_dim)     # (H,OUT), (OUT,)
    gamma1 = jnp.ones((hidden_dim,), jnp.float32)
    beta1 = jnp.zeros((hidden_dim,), jnp.float32)
    gamma2 = jnp.ones((hidden_dim,), jnp.float32)
    beta2 = jnp.zeros((hidden_dim,), jnp.float32)

    # columns: [w1_row0, w1_row1, b1, g1, be1, b2, g2, be2]  -> (H, 8)
    vecs = jnp.stack([w1[0], w1[1], b1, gamma1, beta1, b2, gamma2, beta2], axis=1)
    w2t = w2.T                                                   # (H_out, H_in)
    w3b = jnp.concatenate([w3.T, b3[:, None]], axis=1)           # (OUT, H+1)
    return dict(vecs=vecs, w2t=w2t, w3b=w3b)


def _reference_forward(x, params):
    """Pure-JAX reference with identical semantics (full f32 matmuls)."""
    hi = jax.lax.Precision.HIGHEST
    p1, p2 = x[:, 0, :], x[:, 1, :]
    mip = p1[:, 3] * p2[:, 3] - p1[:, 0] * p2[:, 0] - p1[:, 1] * p2[:, 1] - p1[:, 2] * p2[:, 2]
    d = p2 - p1
    smn = d[:, 3] ** 2 - d[:, 0] ** 2 - d[:, 1] ** 2 - d[:, 2] ** 2

    def zn(v):
        mu = jnp.mean(v)
        var = jnp.mean((v - mu) ** 2)
        return (v - mu) / jnp.sqrt(var + 1e-12)

    feats = jnp.stack([zn(mip), zn(smn)], axis=1)

    vec = params["vecs"]                  # (H, 8)
    H = params["w2t"].shape[0]
    w1 = vec[:, 0:2].T                    # (2, H)
    b1, g1, be1 = vec[:, 2], vec[:, 3], vec[:, 4]
    b2, g2, be2 = vec[:, 5], vec[:, 6], vec[:, 7]
    w2 = params["w2t"].T                  # (H, H)
    w3t, b3 = params["w3b"][:, :H], params["w3b"][:, H]

    def bn_relu(h, g, b):
        mu = jnp.mean(h, axis=0)
        var = jnp.mean((h - mu) ** 2, axis=0)
        return jnp.maximum((h - mu) / jnp.sqrt(var + 1e-5) * g + b, 0.0)

    h = jnp.dot(feats, w1, precision=hi) + b1
    h = bn_relu(h, g1, be1)
    h = jnp.dot(h, w2, precision=hi) + b2
    h = bn_relu(h, g2, be2)
    return jnp.dot(h, w3t.T, precision=hi) + b3


if __name__ == "__main__":
    B, HIDDEN, OUT = 128, 32, 4          # hidden_layer_dimensions=[32], output_dimension=4
    key = jax.random.PRNGKey(0)
    kx, kp = jax.random.split(key)

    # (batch, particle, component) with components (px, py, pz, E)
    x = jax.random.normal(kx, (B, 2, 4), dtype=jnp.float32)
    params = init_params(kp, HIDDEN, OUT)

    out = lorenz_invariant_network(x, params)     # default: full batch in one tile (exact stats)
    jax.block_until_ready(out)
    assert out.shape == (B, OUT) and out.dtype == jnp.float32

    ref = _reference_forward(x, params)
    assert jnp.allclose(out, ref, rtol=1e-2, atol=1e-2), "kernel does not match reference"

    print("KERNEL_OK")
</pallas_src>

<mosaic_0001>
module attributes {stable_mosaic.version = 11 : i64} {
  func.func @lorenz_kernel(%arg0: i32, %arg1: memref<8x128xf32, #tpu.memory_space<vmem>>, %arg2: memref<32x8xf32, #tpu.memory_space<vmem>>, %arg3: memref<32x32xf32, #tpu.memory_space<vmem>>, %arg4: memref<4x33xf32, #tpu.memory_space<vmem>>, %arg5: memref<4x128xf32, #tpu.memory_space<vmem>>) attributes {dimension_semantics = [#tpu.dimension_semantics<parallel>], iteration_bounds = array<i64: 1>, scalar_prefetch = 0 : i64, scratch_operands = 0 : i64, tpu.core_type = #tpu.core_type<tc>, window_params = [{transform_indices = @transform_0, window_bounds = array<i64: 8, 128>}, {pipeline_mode = #tpu.pipeline_mode<synchronous>, transform_indices = @transform_1, window_bounds = array<i64: 32, 8>}, {pipeline_mode = #tpu.pipeline_mode<synchronous>, transform_indices = @transform_2, window_bounds = array<i64: 32, 32>}, {pipeline_mode = #tpu.pipeline_mode<synchronous>, transform_indices = @transform_3, window_bounds = array<i64: 4, 33>}, {transform_indices = @transform_4, window_bounds = array<i64: 4, 128>}]} {
    %c0 = arith.constant 0 : index
    %c0_0 = arith.constant 0 : index
    %0 = vector.load %arg1[%c0, %c0_0] : memref<8x128xf32, #tpu.memory_space<vmem>>, vector<8x128xf32>
    %1 = vector.extract_strided_slice %0 {offsets = [0, 0], sizes = [4, 128], strides = [1, 1]} : vector<8x128xf32> to vector<4x128xf32>
    %2 = vector.extract_strided_slice %0 {offsets = [4, 0], sizes = [4, 128], strides = [1, 1]} : vector<8x128xf32> to vector<4x128xf32>
    %3 = arith.mulf %1, %2 : vector<4x128xf32>
    %4 = vector.extract_strided_slice %3 {offsets = [3, 0], sizes = [1, 128], strides = [1, 1]} : vector<4x128xf32> to vector<1x128xf32>
    %5 = vector.extract_strided_slice %3 {offsets = [0, 0], sizes = [1, 128], strides = [1, 1]} : vector<4x128xf32> to vector<1x128xf32>
    %6 = arith.subf %4, %5 : vector<1x128xf32>
    %7 = vector.extract_strided_slice %3 {offsets = [1, 0], sizes = [1, 128], strides = [1, 1]} : vector<4x128xf32> to vector<1x128xf32>
    %8 = arith.subf %6, %7 : vector<1x128xf32>
    %9 = vector.extract_strided_slice %3 {offsets = [2, 0], sizes = [1, 128], strides = [1, 1]} : vector<4x128xf32> to vector<1x128xf32>
    %10 = arith.subf %8, %9 : vector<1x128xf32>
    %11 = arith.subf %2, %1 : vector<4x128xf32>
    %12 = arith.mulf %11, %11 : vector<4x128xf32>
    %13 = vector.extract_strided_slice %12 {offsets = [3, 0], sizes = [1, 128], strides = [1, 1]} : vector<4x128xf32> to vector<1x128xf32>
    %14 = vector.extract_strided_slice %12 {offsets = [0, 0], sizes = [1, 128], strides = [1, 1]} : vector<4x128xf32> to vector<1x128xf32>
    %15 = arith.subf %13, %14 : vector<1x128xf32>
    %16 = vector.extract_strided_slice %12 {offsets = [1, 0], sizes = [1, 128], strides = [1, 1]} : vector<4x128xf32> to vector<1x128xf32>
    %17 = arith.subf %15, %16 : vector<1x128xf32>
    %18 = vector.extract_strided_slice %12 {offsets = [2, 0], sizes = [1, 128], strides = [1, 1]} : vector<4x128xf32> to vector<1x128xf32>
    %19 = arith.subf %17, %18 : vector<1x128xf32>
    %20 = tpu.concatenate %10, %19 in 0 : vector<1x128xf32>, vector<1x128xf32> -> vector<2x128xf32>
    %cst = arith.constant dense<0.000000e+00> : vector<2xf32>
    %21 = vector.multi_reduction <add>, %20, %cst [1] : vector<2x128xf32> to vector<2xf32>
    %22 = vector.shape_cast %21 : vector<2xf32> to vector<2x1xf32>
    %cst_1 = arith.constant 1.280000e+02 : f32
    %23 = vector.broadcast %cst_1 : f32 to vector<2x1xf32>
    %24 = arith.divf %22, %23 : vector<2x1xf32>
    %25 = vector.broadcast %24 : vector<2x1xf32> to vector<2x128xf32>
    %26 = arith.subf %20, %25 : vector<2x128xf32>
    %27 = arith.mulf %26, %26 : vector<2x128xf32>
    %cst_2 = arith.constant dense<0.000000e+00> : vector<2xf32>
    %28 = vector.multi_reduction <add>, %27, %cst_2 [1] : vector<2x128xf32> to vector<2xf32>
    %29 = vector.shape_cast %28 : vector<2xf32> to vector<2x1xf32>
    %cst_3 = arith.constant 1.280000e+02 : f32
    %30 = vector.broadcast %cst_3 : f32 to vector<2x1xf32>
    %31 = arith.divf %29, %30 : vector<2x1xf32>
    %32 = vector.broadcast %24 : vector<2x1xf32> to vector<2x128xf32>
    %33 = arith.subf %20, %32 : vector<2x128xf32>
    %cst_4 = arith.constant 9.99999996E-13 : f32
    %34 = vector.broadcast %cst_4 : f32 to vector<2x1xf32>
    %35 = arith.addf %31, %34 : vector<2x1xf32>
    %36 = math.rsqrt %35 : vector<2x1xf32>
    %37 = vector.broadcast %36 : vector<2x1xf32> to vector<2x128xf32>
    %38 = arith.mulf %33, %37 : vector<2x128xf32>
    %c0_5 = arith.constant 0 : index
    %c0_6 = arith.constant 0 : index
    %39 = vector.load %arg2[%c0_5, %c0_6] : memref<32x8xf32, #tpu.memory_space<vmem>>, vector<32x8xf32>
    %40 = vector.extract_strided_slice %39 {offsets = [0, 0], sizes = [32, 1], strides = [1, 1]} : vector<32x8xf32> to vector<32x1xf32>
    %41 = vector.extract_strided_slice %38 {offsets = [0, 0], sizes = [1, 128], strides = [1, 1]} : vector<2x128xf32> to vector<1x128xf32>
    %42 = vector.broadcast %40 : vector<32x1xf32> to vector<32x128xf32>
    %43 = vector.broadcast %41 : vector<1x128xf32> to vector<32x128xf32>
    %44 = arith.mulf %42, %43 : vector<32x128xf32>
    %45 = vector.extract_strided_slice %39 {offsets = [0, 1], sizes = [32, 1], strides = [1, 1]} : vector<32x8xf32> to vector<32x1xf32>
    %46 = vector.extract_strided_slice %38 {offsets = [1, 0], sizes = [1, 128], strides = [1, 1]} : vector<2x128xf32> to vector<1x128xf32>
    %47 = vector.broadcast %45 : vector<32x1xf32> to vector<32x128xf32>
    %48 = vector.broadcast %46 : vector<1x128xf32> to vector<32x128xf32>
    %49 = arith.mulf %47, %48 : vector<32x128xf32>
    %50 = arith.addf %44, %49 : vector<32x128xf32>
    %51 = vector.extract_strided_slice %39 {offsets = [0, 2], sizes = [32, 1], strides = [1, 1]} : vector<32x8xf32> to vector<32x1xf32>
    %52 = vector.broadcast %51 : vector<32x1xf32> to vector<32x128xf32>
    %53 = arith.addf %50, %52 : vector<32x128xf32>
    %54 = vector.extract_strided_slice %39 {offsets = [0, 3], sizes = [32, 1], strides = [1, 1]} : vector<32x8xf32> to vector<32x1xf32>
    %55 = vector.extract_strided_slice %39 {offsets = [0, 4], sizes = [32, 1], strides = [1, 1]} : vector<32x8xf32> to vector<32x1xf32>
    %cst_7 = arith.constant dense<0.000000e+00> : vector<32xf32>
    %56 = vector.multi_reduction <add>, %53, %cst_7 [1] : vector<32x128xf32> to vector<32xf32>
    %57 = vector.shape_cast %56 : vector<32xf32> to vector<32x1xf32>
    %cst_8 = arith.constant 1.280000e+02 : f32
    %58 = vector.broadcast %cst_8 : f32 to vector<32x1xf32>
    %59 = arith.divf %57, %58 : vector<32x1xf32>
    %60 = vector.broadcast %59 : vector<32x1xf32> to vector<32x128xf32>
    %61 = arith.subf %53, %60 : vector<32x128xf32>
    %62 = arith.mulf %61, %61 : vector<32x128xf32>
    %cst_9 = arith.constant dense<0.000000e+00> : vector<32xf32>
    %63 = vector.multi_reduction <add>, %62, %cst_9 [1] : vector<32x128xf32> to vector<32xf32>
    %64 = vector.shape_cast %63 : vector<32xf32> to vector<32x1xf32>
    %cst_10 = arith.constant 1.280000e+02 : f32
    %65 = vector.broadcast %cst_10 : f32 to vector<32x1xf32>
    %66 = arith.divf %64, %65 : vector<32x1xf32>
    %67 = vector.broadcast %59 : vector<32x1xf32> to vector<32x128xf32>
    %68 = arith.subf %53, %67 : vector<32x128xf32>
    %cst_11 = arith.constant 9.99999974E-6 : f32
    %69 = vector.broadcast %cst_11 : f32 to vector<32x1xf32>
    %70 = arith.addf %66, %69 : vector<32x1xf32>
    %71 = math.rsqrt %70 : vector<32x1xf32>
    %72 = vector.broadcast %71 : vector<32x1xf32> to vector<32x128xf32>
    %73 = arith.mulf %68, %72 : vector<32x128xf32>
    %74 = vector.broadcast %54 : vector<32x1xf32> to vector<32x128xf32>
    %75 = arith.mulf %73, %74 : vector<32x128xf32>
    %76 = vector.broadcast %55 : vector<32x1xf32> to vector<32x128xf32>
    %77 = arith.addf %75, %76 : vector<32x128xf32>
    %cst_12 = arith.constant 0.000000e+00 : f32
    %78 = vector.broadcast %cst_12 : f32 to vector<32x128xf32>
    %79 = arith.maximumf %77, %78 : vector<32x128xf32>
    %c0_13 = arith.constant 0 : index
    %c0_14 = arith.constant 0 : index
    %80 = vector.load %arg3[%c0_13, %c0_14] : memref<32x32xf32, #tpu.memory_space<vmem>>, vector<32x32xf32>
    %cst_15 = arith.constant dense<0.000000e+00> : vector<32x128xf32>
    %81 = tpu.matmul %80, %79, %cst_15 {dimension_numbers = #tpu.dot_dimension_numbers<[1], [0], [0], [1], [0, 0, 1, 1], [], []>} : vector<32x32xf32>, vector<32x128xf32>, vector<32x128xf32> -> vector<32x128xf32>
    %82 = vector.extract_strided_slice %39 {offsets = [0, 5], sizes = [32, 1], strides = [1, 1]} : vector<32x8xf32> to vector<32x1xf32>
    %83 = vector.broadcast %82 : vector<32x1xf32> to vector<32x128xf32>
    %84 = arith.addf %81, %83 : vector<32x128xf32>
    %85 = vector.extract_strided_slice %39 {offsets = [0, 6], sizes = [32, 1], strides = [1, 1]} : vector<32x8xf32> to vector<32x1xf32>
    %86 = vector.extract_strided_slice %39 {offsets = [0, 7], sizes = [32, 1], strides = [1, 1]} : vector<32x8xf32> to vector<32x1xf32>
    %cst_16 = arith.constant dense<0.000000e+00> : vector<32xf32>
    %87 = vector.multi_reduction <add>, %84, %cst_16 [1] : vector<32x128xf32> to vector<32xf32>
    %88 = vector.shape_cast %87 : vector<32xf32> to vector<32x1xf32>
    %cst_17 = arith.constant 1.280000e+02 : f32
    %89 = vector.broadcast %cst_17 : f32 to vector<32x1xf32>
    %90 = arith.divf %88, %89 : vector<32x1xf32>
    %91 = vector.broadcast %90 : vector<32x1xf32> to vector<32x128xf32>
    %92 = arith.subf %84, %91 : vector<32x128xf32>
    %93 = arith.mulf %92, %92 : vector<32x128xf32>
    %cst_18 = arith.constant dense<0.000000e+00> : vector<32xf32>
    %94 = vector.multi_reduction <add>, %93, %cst_18 [1] : vector<32x128xf32> to vector<32xf32>
    %95 = vector.shape_cast %94 : vector<32xf32> to vector<32x1xf32>
    %cst_19 = arith.constant 1.280000e+02 : f32
    %96 = vector.broadcast %cst_19 : f32 to vector<32x1xf32>
    %97 = arith.divf %95, %96 : vector<32x1xf32>
    %98 = vector.broadcast %90 : vector<32x1xf32> to vector<32x128xf32>
    %99 = arith.subf %84, %98 : vector<32x128xf32>
    %cst_20 = arith.constant 9.99999974E-6 : f32
    %100 = vector.broadcast %cst_20 : f32 to vector<32x1xf32>
    %101 = arith.addf %97, %100 : vector<32x1xf32>
    %102 = math.rsqrt %101 : vector<32x1xf32>
    %103 = vector.broadcast %102 : vector<32x1xf32> to vector<32x128xf32>
    %104 = arith.mulf %99, %103 : vector<32x128xf32>
    %105 = vector.broadcast %85 : vector<32x1xf32> to vector<32x128xf32>
    %106 = arith.mulf %104, %105 : vector<32x128xf32>
    %107 = vector.broadcast %86 : vector<32x1xf32> to vector<32x128xf32>
    %108 = arith.addf %106, %107 : vector<32x128xf32>
    %cst_21 = arith.constant 0.000000e+00 : f32
    %109 = vector.broadcast %cst_21 : f32 to vector<32x128xf32>
    %110 = arith.maximumf %108, %109 : vector<32x128xf32>
    %c0_22 = arith.constant 0 : index
    %c0_23 = arith.constant 0 : index
    %111 = vector.load %arg4[%c0_22, %c0_23] : memref<4x33xf32, #tpu.memory_space<vmem>>, vector<4x33xf32>
    %112 = vector.extract_strided_slice %111 {offsets = [0, 0], sizes = [4, 32], strides = [1, 1]} : vector<4x33xf32> to vector<4x32xf32>
    %cst_24 = arith.constant dense<0.000000e+00> : vector<4x128xf32>
    %113 = tpu.matmul %112, %110, %cst_24 {dimension_numbers = #tpu.dot_dimension_numbers<[1], [0], [0], [1], [0, 0, 1, 1], [], []>} : vector<4x32xf32>, vector<32x128xf32>, vector<4x128xf32> -> vector<4x128xf32>
    %114 = vector.extract_strided_slice %111 {offsets = [0, 32], sizes = [4, 1], strides = [1, 1]} : vector<4x33xf32> to vector<4x1xf32>
    %115 = vector.broadcast %114 : vector<4x1xf32> to vector<4x128xf32>
    %116 = arith.addf %113, %115 : vector<4x128xf32>
    %c0_25 = arith.constant 0 : index
    %c0_26 = arith.constant 0 : index
    %117 = vector.load %arg5[%c0_25, %c0_26] : memref<4x128xf32, #tpu.memory_space<vmem>>, vector<4x128xf32>
    tpu.vector_store %arg5[%c0_25, %c0_26], %116 {strides = array<i32>} : memref<4x128xf32, #tpu.memory_space<vmem>>, vector<4x128xf32>,
    return
  }
  func.func @transform_0(%arg0: i32) -> (i32, i32) {
    %c0_i32 = arith.constant 0 : i32
    %c0_i32_0 = arith.constant 0 : i32
    return %c0_i32, %arg0 : i32, i32
  }
  func.func @transform_1(%arg0: i32) -> (i32, i32) {
    %c0_i32 = arith.constant 0 : i32
    %c0_i32_0 = arith.constant 0 : i32
    %c0_i32_1 = arith.constant 0 : i32
    return %c0_i32, %c0_i32_0 : i32, i32
  }
  func.func @transform_2(%arg0: i32) -> (i32, i32) {
    %c0_i32 = arith.constant 0 : i32
    %c0_i32_0 = arith.constant 0 : i32
    %c0_i32_1 = arith.constant 0 : i32
    return %c0_i32, %c0_i32_0 : i32, i32
  }
  func.func @transform_3(%arg0: i32) -> (i32, i32) {
    %c0_i32 = arith.constant 0 : i32
    %c0_i32_0 = arith.constant 0 : i32
    %c0_i32_1 = arith.constant 0 : i32
    return %c0_i32, %c0_i32_0 : i32, i32
  }
  func.func @transform_4(%arg0: i32) -> (i32, i32) {
    %c0_i32 = arith.constant 0 : i32
    %c0_i32_0 = arith.constant 0 : i32
    return %c0_i32, %arg0 : i32, i32
  }
}

</mosaic_0001>

<bundles_post_ra>
// kernel: tpu_custom_call.1
= control target key start
LH: loop header
LB: loop body
LE: loop exit
PB: predicated region body
PF: predicated region fallthrough
CT: control target
= control target key end

     0   :  { %v666_v3 = vmov 0   ;;  %s801_s0 = inlined_call_operand.vmem [shape: f32[8,128], index: 0, kind: input, shape index: {}]   ;;  %s802_s1 = inlined_call_operand.vmem [shape: f32[32,8], index: 1, kind: input, shape index: {}]   ;;  %s803_s2 = inlined_call_operand.vmem [shape: f32[32,32], index: 2, kind: input, shape index: {}]   ;;  %s804_s3 = inlined_call_operand.vmem [shape: f32[4,33], index: 3, kind: input, shape index: {}]   ;;  %s805_s4 = inlined_call_operand.hbm [shape: f32[4,128], index: 4, kind: output, shape index: {}]  }
   0x1   :  { %v18_v0 = vld [vmem:[%s801_s0] sm:$0xff]  ;;  %605 = vset.pattern.permute.xlu1 %v666_v3 }
   0x2   :  { %v710_v1 = vld [vmem:[%s802_s1] sm:$0xff]  ;;  %v20_v2 = vrot.slane %v18_v0, 4 }
   0x3   :  { %9 = vsyncpa [#allocation3], 0  ;;  %74 = vperm.xlu1 %605, %v710_v1   ;;  %vm51_vm0 = vcmask 1040384   ;;  %vm53_vm1 = vcmask 1041408   ;;  %v717_v23 = vld [vmem:[%s802_s1 + $0x8] sm:$0xff]  ;;  %v667_v24 = vmov 1   ;;  %v92_v44 = vlaneseq }
   0x4   :  { %v22_v4 = vmul.f32 %v20_v2, %v18_v0  ;;  %v33_v5 = vsub.f32 %v18_v0, %v20_v2  ;;  %606 = vset.pattern.permute.xlu0 %v667_v24  ;;  %v724_v25 = vld [vmem:[%s802_s1 + $0x10] sm:$0xff]  ;;  %v730_v26 = vld [vmem:[%s802_s1 + $0x18] sm:$0xff]  ;;  %v668_v27 = vmov 2   ;;  %v669_v33 = vmov 3  }
   0x5   :  { %v93_v46 = vshrl.u32 %v92_v44, 7  ;;  %vm256_vm2 = vcmask 261120   ;;  %vm675_vm3 = vmmov 0  }
   0x6   :  { %v24_v6 = vrot.slane %v22_v4, 5  ;;  %v27_v7 = vrot.slane %v22_v4, 6  ;;  %v34_v8 = vmul.f32 %v33_v5, %v33_v5  ;;  %v30_v10 = vrot.slane %v22_v4, 7 }
   0x7   :  { %79 = vperm.xlu1 %605, %v717_v23   ;;  %v118_v47 = vsub.s32 1, %v93_v46  ;;  %v94_v48 = vsub.s32 0, %v93_v46 }
   0x8   :  { %v26_v9 = vsub.f32 %v22_v4, %v24_v6  ;;  %v36_v11 = vrot.slane %v34_v8, 5  ;;  %v39_v12 = vrot.slane %v34_v8, 6  ;;  %v42_v15 = vrot.slane %v34_v8, 7 }
   0xa   :  { %v29_v13 = vsub.f32 %v26_v9, %v27_v7  ;;  %v38_v14 = vsub.f32 %v34_v8, %v36_v11 }
   0xb   :  { %607 = vset.pattern.permute.xlu1 %v667_v24 }
   0xc   :  { %v32_v16 = vsub.f32 %v29_v13, %v30_v10  ;;  %v41_v17 = vsub.f32 %v38_v14, %v39_v12  ;;  %105 = vperm.xlu1 %607, %v717_v23   ;;  %v670_v10 = vmov 4  }
   0xe   :  { %v44_v18 = vsub.f32 %v41_v17, %v42_v15  ;;  %v46_v19 = vrot.slane %v32_v16, 3 }
  0x10   :  { %v49_v20 = vrot.slane %v44_v18, 6  ;;  %608 = vset.pattern.permute.xlu1 %v666_v3 }
  0x11   :  { %84 = vperm.xlu1 %608, %v724_v25  }
  0x12   :  { %v52_v21 = vsel %vm51_vm0, %v46_v19, %v49_v20 }
  0x13   :  { %v54_v22 = vsel %vm53_vm1, %v52_v21, 0.0 }
  0x14   :  { %55 = vadd.xlane.f32.xlu0 %v54_v22 }
  0x15   :  { %89 = vperm.xlu1 %608, %v730_v26  }
  0x19   :  { %609 = vset.pattern.permute.xlu1 %v667_v24 }
  0x1a   :  { %109 = vperm.xlu1 %609, %v724_v25  }
  0x1e   :  { %113 = vperm.xlu1 %609, %v730_v26  }
  0x22   :  { %610 = vset.pattern.permute.xlu1 %v668_v27 }
  0x23   :  { %129 = vperm.xlu1 %610, %v710_v1  }
  0x27   :  { %133 = vperm.xlu1 %610, %v717_v23  }
  0x2b   :  { %137 = vperm.xlu1 %610, %v724_v25  }
  0x2f   :  { %141 = vperm.xlu1 %610, %v730_v26  }
  0x33   :  { %611 = vset.pattern.permute.xlu1 %v669_v33 }
  0x82   :  { %v75_v34 = vpop.permute.xlu1 %74 }
  0x86   :  { %v80_v35 = vpop.permute.xlu1 %79 }
  0x8b   :  { %v106_v36 = vpop.permute.xlu1 %105 }
  0x90   :  { %v85_v37 = vpop.permute.xlu1 %84 }
  0x94   :  { %v90_v38 = vpop.permute.xlu1 %89 }
  0x99   :  { %v110_v39 = vpop.permute.xlu1 %109 }
  0x9d   :  { %v114_v43 = vpop.permute.xlu1 %113 }
  0xa1   :  { %v56_v28 = vpop.xlane.xlu0 %55 }
  0xa2   :  { %v58_v29 = vmul.f32 0.0078125, %v56_v28  ;;  %v130_v45 = vpop.permute.xlu1 %129 }
  0xa4   :  { %v59_v30 = vsub.f32 %v52_v21, %v58_v29 }
  0xa6   :  { %v60_v31 = vmul.f32 %v59_v30, %v59_v30  ;;  %v134_v50 = vpop.permute.xlu1 %133 }
  0xa8   :  { %v61_v32 = vsel %vm53_vm1, %v60_v31, 0.0  ;;  %v671_v31 = vmov 5  }
  0xa9   :  { %62 = vadd.xlane.f32.xlu0 %v61_v32 }
  0xaa   :  { %v138_v59 = vpop.permute.xlu1 %137 }
  0xae   :  { %v142_v7 = vpop.permute.xlu1 %141 }
  0xbf   :  { %101 = vperm.xlu0 %606, %v710_v1  }
  0xc3   :  { %612 = vset.pattern.permute.xlu0 %v669_v33 }
 0x136   :  { %v63_v40 = vpop.xlane.xlu0 %62 }
 0x137   :  { %v64_v41 = vmul.f32 0.0078125, %v63_v40 }
 0x139   :  { %v65_v42 = vadd.f32 1e-12, %v64_v41 }
 0x13b   :  { %624 = vrsqrt.f32 %v65_v42 }
 0x13e   :  { %v102_v54 = vpop.permute.xlu0 %101 }
 0x145   :  { %v625_v49 = vpop.eup %624 }
 0x146   :  { %v67_v51 = vmul.f32 %v625_v49, %v59_v30  ;;  %v236_v30 = vld [vmem:[%s803_s2] sm:$0xff] }
 0x147   :  { %561 = vmatprep.mubr.msk.f32.mxu0 %vm256_vm2, %v236_v30 }
 0x148   :  { %v119_v52 = vrot.slane %v67_v51, %v118_v47  ;;  %v95_v53 = vrot.slane %v67_v51, %v94_v48 }
 0x14a   :  { %v123_v55 = vmul.f32 %v119_v52, %v114_v43  ;;  %v97_v56 = vmul.f32 %v95_v53, %v80_v35  ;;  %v121_v57 = vmul.f32 %v119_v52, %v106_v36  ;;  %v98_v58 = vmul.f32 %v95_v53, %v85_v37 }
 0x14b   :  { %v122_v60 = vmul.f32 %v119_v52, %v110_v39  ;;  %v99_v61 = vmul.f32 %v95_v53, %v90_v38  ;;  %v96_v62 = vmul.f32 %v95_v53, %v75_v34  ;;  %v120_v63 = vmul.f32 %v119_v52, %v102_v54 }
 0x14c   :  { %v125_v0 = vadd.f32 %v121_v57, %v97_v56 }
 0x14d   :  { %v124_v2 = vadd.f32 %v120_v63, %v96_v62  ;;  %v127_v4 = vadd.f32 %v123_v55, %v99_v61  ;;  %v126_v5 = vadd.f32 %v122_v60, %v98_v58 }
 0x14e   :  { %v145_v3 = vadd.f32 %v134_v50, %v125_v0 }
 0x14f   :  { %v144_v6 = vadd.f32 %v130_v45, %v124_v2  ;;  %v147_v8 = vadd.f32 %v142_v7, %v127_v4  ;;  %v146_v9 = vadd.f32 %v138_v59, %v126_v5 }
 0x150   :  { %150 = vadd.xlane.f32.xlu0 %v145_v3 }
 0x151   :  { %148 = vadd.xlane.f32.xlu1 %v144_v6 }
 0x154   :  { %154 = vadd.xlane.f32.xlu0 %v147_v8 }
 0x155   :  { %152 = vadd.xlane.f32.xlu1 %v146_v9 }
 0x166   :  { %193 = vperm.xlu1 %611, %v710_v1  }
 0x16a   :  { %613 = vset.pattern.permute.xlu1 %v670_v10 }
 0x1dd   :  { %v151_v11 = vpop.xlane.xlu0 %150 }
 0x1de   :  { %v149_v12 = vpop.xlane.xlu1 %148  ;;  %v157_v13 = vmul.f32 0.0078125, %v151_v11  ;;  %v237_v11 = vld [vmem:[%s803_s2 + $0x8] sm:$0xff] }
 0x1df   :  { %v156_v14 = vmul.f32 0.0078125, %v149_v12  ;;  %v238_v12 = vld [vmem:[%s803_s2 + $0x10] sm:$0xff] }
 0x1e0   :  { %v161_v15 = vsub.f32 %v145_v3, %v157_v13  ;;  %v239_v13 = vld [vmem:[%s803_s2 + $0x18] sm:$0xff] }
 0x1e1   :  { %v160_v16 = vsub.f32 %v144_v6, %v156_v14  ;;  %v155_v17 = vpop.xlane.xlu0 %154 }
 0x1e2   :  { %v153_v18 = vpop.xlane.xlu1 %152  ;;  %v159_v19 = vmul.f32 0.0078125, %v155_v17  ;;  %v165_v20 = vmul.f32 %v161_v15, %v161_v15 }
 0x1e3   :  { %v158_v21 = vmul.f32 0.0078125, %v153_v18  ;;  %v164_v22 = vmul.f32 %v160_v16, %v160_v16 }
 0x1e4   :  { %v163_v24 = vsub.f32 %v147_v8, %v159_v19  ;;  %170 = vadd.xlane.f32.xlu0 %v165_v20 }
 0x1e5   :  { %v162_v27 = vsub.f32 %v146_v9, %v158_v21  ;;  %168 = vadd.xlane.f32.xlu1 %v164_v22 }
 0x1e6   :  { %v167_v28 = vmul.f32 %v163_v24, %v163_v24  ;;  %v194_v32 = vpop.permute.xlu1 %193 }
 0x1e7   :  { %v166_v29 = vmul.f32 %v162_v27, %v162_v27 }
 0x1e8   :  { %174 = vadd.xlane.f32.xlu0 %v167_v28 }
 0x1e9   :  { %172 = vadd.xlane.f32.xlu1 %v166_v29  ;;  %v672_v29 = vmov 6  }
 0x1fa   :  { %213 = vperm.xlu1 %613, %v710_v1  }
 0x1fe   :  { %217 = vperm.xlu1 %613, %v717_v23   ;;  %197 = vperm.xlu0 %612, %v717_v23  }
 0x202   :  { %614 = vset.pattern.permute.xlu1 %v669_v33  ;;  %617 = vset.pattern.permute.xlu0 %v671_v31 }
 0x203   :  { %201 = vperm.xlu1 %614, %v724_v25   ;;  %249 = vperm.xlu0 %617, %v724_v25  }
 0x207   :  { %205 = vperm.xlu1 %614, %v730_v26   ;;  %618 = vset.pattern.permute.xlu0 %v672_v29 }
 0x20b   :  { %615 = vset.pattern.permute.xlu1 %v670_v10 }
 0x20c   :  { %221 = vperm.xlu1 %615, %v724_v25  }
 0x210   :  { %225 = vperm.xlu1 %615, %v730_v26  }
 0x214   :  { %616 = vset.pattern.permute.xlu1 %v671_v31 }
 0x215   :  { %241 = vperm.xlu1 %616, %v710_v1  }
 0x219   :  { %245 = vperm.xlu1 %616, %v717_v23  }
 0x21d   :  { %253 = vperm.xlu1 %616, %v730_v26  }
 0x221   :  { %619 = vset.pattern.permute.xlu1 %v672_v29 }
 0x271   :  { %v171_v33 = vpop.xlane.xlu0 %170 }
 0x272   :  { %v169_v34 = vpop.xlane.xlu1 %168  ;;  %v177_v35 = vmul.f32 0.0078125, %v171_v33 }
 0x273   :  { %v176_v36 = vmul.f32 0.0078125, %v169_v34 }
 0x274   :  { %v181_v37 = vadd.f32 1e-05, %v177_v35 }
 0x275   :  { %v180_v38 = vadd.f32 1e-05, %v176_v36  ;;  %v175_v39 = vpop.xlane.xlu0 %174 }
 0x276   :  { %626 = vrsqrt.f32 %v181_v37  ;;  %v173_v40 = vpop.xlane.xlu1 %172  ;;  %v179_v41 = vmul.f32 0.0078125, %v175_v39 }
 0x277   :  { %628 = vrsqrt.f32 %v180_v38  ;;  %v178_v42 = vmul.f32 0.0078125, %v173_v40 }
 0x278   :  { %v183_v44 = vadd.f32 1e-05, %v179_v41 }
 0x279   :  { %v182_v43 = vadd.f32 1e-05, %v178_v42 }
 0x27a   :  { %v214_v45 = vpop.permute.xlu1 %213 }
 0x27b   :  { %630 = vrsqrt.f32 %v182_v43 }
 0x27c   :  { %632 = vrsqrt.f32 %v183_v44 }
 0x27d   :  { %v198_v48 = vpop.permute.xlu0 %197 }
 0x27e   :  { %v218_v46 = vpop.permute.xlu1 %217 }
 0x280   :  { %v627_v47 = vpop.eup %626 }
 0x281   :  { %v629_v49 = vpop.eup %628  ;;  %v189_v50 = vmul.f32 %v627_v47, %v161_v15  ;;  %v674_v47 = vmov 0.0|0.0  }
 0x282   :  { %v188_v51 = vmul.f32 %v629_v49, %v160_v16  ;;  %v202_v52 = vpop.permute.xlu1 %201  ;;  %v250_v20 = vpop.permute.xlu0 %249  ;;  %586 = vmatprep.subr.bf16.mxu1 %v674_v47 }
 0x283   :  { %v209_v53 = vmul.f32 %v198_v48, %v189_v50  ;;  %v676_v48 = vmov 0.0  }
 0x284   :  { %v208_v54 = vmul.f32 %v194_v32, %v188_v51  ;;  %575 = vmatprep.mubr.msk.f32.mxu1 %vm675_vm3, %v676_v48 }
 0x285   :  { %v631_v55 = vpop.eup %630  ;;  %v229_v56 = vadd.f32 %v218_v46, %v209_v53  ;;  %v673_v46 = vmov 7  }
 0x286   :  { %v228_v57 = vadd.f32 %v214_v45, %v208_v54  ;;  %v206_v58 = vpop.permute.xlu1 %205  ;;  %v633_v59 = vpop.eup %632  ;;  %v190_v62 = vmul.f32 %v631_v55, %v162_v27 }
 0x287   :  { %v233_v60 = vmax.f32 %v229_v56, 0.0  ;;  %v191_v63 = vmul.f32 %v633_v59, %v163_v24 }
 0x288   :  { %v232_v61 = vmax.f32 %v228_v57, 0.0  ;;  %v210_v3 = vmul.f32 %v202_v52, %v190_v62 }
 0x289   :  { %v211_v4 = vmul.f32 %v206_v58, %v191_v63 }
 0x28a   :  { %v578_v0 = vpack.c.bf16 %v233_v60, %v232_v61 }
 0x28b   :  { %v222_v2 = vpop.permute.xlu1 %221 }
 0x28c   :  { %579 = vmatprep.subr.bf16.mxu0 %v578_v0  ;;  %v230_v5 = vadd.f32 %v222_v2, %v210_v3 }
 0x28d   :  { %581 = vmatpush3.bf16.msra.mxu0 %v578_v0 }
 0x28e   :  { %v234_v8 = vmax.f32 %v230_v5, 0.0 }
 0x28f   :  { %v226_v6 = vpop.permute.xlu1 %225 }
 0x290   :  { %v231_v7 = vadd.f32 %v226_v6, %v211_v4 }
 0x292   :  { %v235_v9 = vmax.f32 %v231_v7, 0.0 }
 0x294   :  { %v582_v10 = vpack.c.bf16 %v235_v9, %v234_v8  ;;  %v242_v14 = vpop.permute.xlu1 %241 }
 0x296   :  { %583 = vmatprep.subr.bf16.mxu0 %v582_v10 }
 0x297   :  { %585 = vmatpush3.bf16.msra.mxu0 %v582_v10 }
 0x298   :  { %v246_v15 = vpop.permute.xlu1 %245 }
 0x29a   :  { %562 = vmatmul.mubr.msk.f32.vlgmr.msra.gmra.mrb[0].mxu0 %vm256_vm2, %v237_v11 }
 0x29b   :  { %564 = vmatprep.mubr.msk.f32.mxu0 %vm256_vm2, %v238_v12 }
 0x29c   :  { %v254_v21 = vpop.permute.xlu1 %253 }
 0x29e   :  { %565 = vmatmul.mubr.msk.f32.gmra.mrb[2].mxu0 %vm256_vm2, %v239_v13 }
 0x36d   :  { %v563_v16 = vpop.f32.mrb[0].mxu0 }
 0x36e   :  { %v341_v17 = vadd.f32 %v563_v16, %v246_v15  ;;  %v335_v18 = vpop.f32.mrb[1].mxu0 }
 0x36f   :  { %v336_v19 = vadd.f32 %v335_v18, %v242_v14 }
 0x370   :  { %356 = vadd.xlane.f32.xlu0 %v341_v17 }
 0x371   :  { %v566_v22 = vpop.f32.mrb[2].mxu0  ;;  %354 = vadd.xlane.f32.xlu1 %v336_v19 }
 0x372   :  { %v351_v24 = vadd.f32 %v566_v22, %v254_v21  ;;  %v345_v27 = vpop.f32.mrb[3].mxu0 }
 0x373   :  { %v346_v28 = vadd.f32 %v345_v27, %v250_v20 }
 0x375   :  { %360 = vadd.xlane.f32.xlu1 %v351_v24  ;;  %358 = vadd.xlane.f32.xlu0 %v346_v28 }
 0x3fd   :  { %v357_v30 = vpop.xlane.xlu0 %356 }
 0x3fe   :  { %v363_v31 = vmul.f32 0.0078125, %v357_v30  ;;  %v355_v32 = vpop.xlane.xlu1 %354 }
 0x3ff   :  { %v362_v33 = vmul.f32 0.0078125, %v355_v32 }
 0x400   :  { %v367_v34 = vsub.f32 %v341_v17, %v363_v31 }
 0x401   :  { %v366_v35 = vsub.f32 %v336_v19, %v362_v33 }
 0x402   :  { %v361_v36 = vpop.xlane.xlu1 %360  ;;  %v359_v37 = vpop.xlane.xlu0 %358  ;;  %v371_v38 = vmul.f32 %v367_v34, %v367_v34 }
 0x403   :  { %v365_v39 = vmul.f32 0.0078125, %v361_v36  ;;  %v364_v40 = vmul.f32 0.0078125, %v359_v37  ;;  %v370_v41 = vmul.f32 %v366_v35, %v366_v35 }
 0x404   :  { %376 = vadd.xlane.f32.xlu1 %v371_v38 }
 0x405   :  { %v772_v42 = vsub.f32 %v351_v24, %v365_v39  ;;  %v368_v43 = vsub.f32 %v346_v28, %v364_v40  ;;  %374 = vadd.xlane.f32.xlu0 %v370_v41 }
 0x407   :  { %v373_v44 = vmul.f32 %v772_v42, %v772_v42  ;;  %v372_v45 = vmul.f32 %v368_v43, %v368_v43 }
 0x409   :  { %380 = vadd.xlane.f32.xlu1 %v373_v44  ;;  %378 = vadd.xlane.f32.xlu0 %v372_v45 }
 0x41a   :  { %403 = vperm.xlu1 %619, %v717_v23  }
 0x41e   :  { %620 = vset.pattern.permute.xlu1 %v673_v46 }
 0x41f   :  { %419 = vperm.xlu1 %620, %v710_v1   ;;  %399 = vperm.xlu0 %618, %v710_v1   ;;  %v442_v1 = vld [vmem:[%s804_s3] sm:$0xf]  ;;  %s678_s3 = smov [#allocation2]  }
 0x420   :  { %s527_s6 = sshll.u32 %s678_s3, 4  ;;  %s528_s6 = int_to_ptr.vmem [resolvable:$true] %s527_s6 }
 0x421   :  { %s642_s7 = scalar_lea.vmem %s528_s6, 64  ;;  %p647_p1 = scmp.lt.s32.totalorder %s528_s6, %s528_s6 }
 0x422   :  { %p643_p0 = scmp.ne.s32.totalorder %s528_s6, %s642_s7  ;;  %p648_p2 = scmp.lt.s32.totalorder %s642_s7, %s642_s7 }
 0x423   :  { %423 = vperm.xlu1 %620, %v717_v23   ;;  %v677_v23 = vmov 32  }
 0x424   :  { %623 = vset.pattern.permute.xlu0 %v677_v23  ;;  %p649_p3 = por %p648_p2, %p647_p1 }
 0x425   :  { %445 = vperm.xlu0 %623, %v442_v1  }
 0x426   :  { %p650_p4 = pnand %p649_p3, %p643_p0 }
 0x427   :  { %621 = vset.pattern.permute.xlu1 %v672_v29 }
 0x428   :  { %407 = vperm.xlu1 %621, %v724_v25  }
 0x42c   :  { %411 = vperm.xlu1 %621, %v730_v26  }
 0x430   :  { %622 = vset.pattern.permute.xlu1 %v673_v46 }
 0x431   :  { %427 = vperm.xlu1 %622, %v724_v25  }
 0x435   :  { %431 = vperm.xlu1 %622, %v730_v26  }
 0x491   :  { %v377_v49 = vpop.xlane.xlu1 %376 }
 0x492   :  { %v383_v50 = vmul.f32 0.0078125, %v377_v49  ;;  %v375_v51 = vpop.xlane.xlu0 %374 }
 0x493   :  { %v382_v52 = vmul.f32 0.0078125, %v375_v51 }
 0x494   :  { %v387_v53 = vadd.f32 1e-05, %v383_v50 }
 0x495   :  { %v386_v54 = vadd.f32 1e-05, %v382_v52 }
 0x496   :  { %634 = vrsqrt.f32 %v387_v53  ;;  %v381_v25 = vpop.xlane.xlu1 %380  ;;  %v379_v55 = vpop.xlane.xlu0 %378 }
 0x497   :  { %636 = vrsqrt.f32 %v386_v54  ;;  %v384_v26 = vmul.f32 0.0078125, %v379_v55  ;;  %v385_v57 = vmul.f32 0.0078125, %v381_v25 }
 0x499   :  { %v388_v58 = vadd.f32 1e-05, %v384_v26  ;;  %v389_v61 = vadd.f32 1e-05, %v385_v57 }
 0x49a   :  { %v404_v56 = vpop.permute.xlu1 %403 }
 0x49b   :  { %638 = vrsqrt.f32 %v388_v58 }
 0x49c   :  { %640 = vrsqrt.f32 %v389_v61 }
 0x49e   :  { %v420_v59 = vpop.permute.xlu1 %419  ;;  %v400_v0 = vpop.permute.xlu0 %399 }
 0x4a0   :  { %v635_v60 = vpop.eup %634 }
 0x4a1   :  { %v637_v62 = vpop.eup %636  ;;  %v395_v63 = vmul.f32 %v635_v60, %v367_v34 }
 0x4a2   :  { %v424_v2 = vpop.permute.xlu1 %423  ;;  %v394_v3 = vmul.f32 %v637_v62, %v366_v35 }
 0x4a3   :  { %v415_v4 = vmul.f32 %v404_v56, %v395_v63 }
 0x4a4   :  { %v414_v5 = vmul.f32 %v400_v0, %v394_v3  ;;  %v446_v29 = vpop.permute.xlu0 %445 }
 0x4a5   :  { %v435_v6 = vadd.f32 %v424_v2, %v415_v4  ;;  %v639_v11 = vpop.eup %638 }
 0x4a6   :  { %v434_v7 = vadd.f32 %v420_v59, %v414_v5  ;;  %v396_v14 = vmul.f32 %v639_v11, %v368_v43  ;;  %v641_v15 = vpop.eup %640 }
 0x4a7   :  { %v439_v8 = vmax.f32 %v435_v6, 0.0  ;;  %v408_v9 = vpop.permute.xlu1 %407  ;;  %v397_v18 = vmul.f32 %v641_v15, %v772_v42 }
 0x4a8   :  { %v438_v10 = vmax.f32 %v434_v7, 0.0  ;;  %v416_v17 = vmul.f32 %v408_v9, %v396_v14 }
 0x4aa   :  { %v587_v12 = vpack.c.bf16 %v439_v8, %v438_v10 }
 0x4ab   :  { %v412_v13 = vpop.permute.xlu1 %411 }
 0x4ac   :  { %588 = vmatpush3.bf16.msra.mxu1 %v587_v12  ;;  %v417_v19 = vmul.f32 %v412_v13, %v397_v18 }
 0x4ad   :  { %589 = vmatprep.subr.bf16.mxu1 %v674_v47 }
 0x4b0   :  { %v428_v16 = vpop.permute.xlu1 %427 }
 0x4b1   :  { %v436_v20 = vadd.f32 %v428_v16, %v416_v17 }
 0x4b3   :  { %v440_v24 = vmax.f32 %v436_v20, 0.0 }
 0x4b4   :  { %v432_v21 = vpop.permute.xlu1 %431 }
 0x4b5   :  { %v437_v22 = vadd.f32 %v432_v21, %v417_v19 }
 0x4b7   :  { %v441_v27 = vmax.f32 %v437_v22, 0.0 }
 0x4b9   :  { %v590_v28 = vpack.c.bf16 %v441_v27, %v440_v24 }
 0x4bb   :  { %591 = vmatpush3.bf16.msra.mxu1 %v590_v28 }
 0x4be   :  { %576 = vmatmul.mubr.msk.f32.vlgmr.msra.gmra.mrb[0].mxu1 %vm256_vm2, %v442_v1 }
 0x591   :  { %v516_v30 = vpop.f32.mrb[0].mxu1 }
 0x592   :  { %v517_v31 = vadd.f32 %v516_v30, %v446_v29  ;;  %v577_v32 = vpop.f32.mrb[1].mxu1 }
 0x594   :  { %520 = vst [vmem:[#allocation2] sm:$0xf] %v517_v31 }
 0x595   :  { %653 = shalt.err (!%p650_p4)
}
 0x596   :  { %s654_s10 = scalar_lea.hbm %s805_s4, 64 }
 0x597   :  { %p655_p5 = scmp.ne.s32.totalorder %s805_s4, %s654_s10  ;;  %p658_p6 = scmp.lt.u32.totalorder %s654_s10, %s805_s4 }
 0x599   :  { %p660_p7 = pnand %p658_p6, %p655_p5 }
 0x59b   :  { %663 = shalt.err (!%p660_p7)
}
 0x59c   :  { %530 = dma.vmem_to_hbm [thread:$0]  %s528_s6, 64, %s805_s4, [#allocation3]  }
 0x59d   :  { %664 = dma.done.wait [#allocation3], 64  }
 0x59e   :  { %665 = vsyncadd [#allocation3], 4294967232 }
 0x59f   :  { %534 = vsyncpa [#allocation3], 1 }

</bundles_post_ra>
